<compile_context>
chip_gen: v5e
topology: v5e:2x2
jax: 0.10.0
libtpu: 0.0.40
codegen_flags: <defaults>
</compile_context>

<pallas_src>
from functools import partial

import jax
import jax.numpy as jnp
from jax.experimental import pallas as pl
from jax.experimental.pallas import tpu as pltpu


def _round_up(x, m):
    return ((x + m - 1) // m) * m


def _fused_kernel(xf_ref, mask_ref, w1_ref, b1_ref, w2_ref, b2_ref,
                  w3_ref, b3_ref, out_ref, ext_ref, *,
                  ns, wp, lpad, pad, nb, span):
    # xf_ref  : (nb, 3, Lpad)  zero-padded input images, flattened (Hp, Wp) rows
    # mask_ref: (1, Lpad)      1.0 on valid (H2, W2) pixels, 0.0 on padding
    # w1_ref  : (8, 3)         1x1 conv weights               (co, ci)
    # w2/w3   : (3, 3, 8, 8)   3x3 conv weights, per-tap      (kh, kw, co, ci)
    # b*_ref  : (8, 1)
    # out_ref : (nb, 8, Lpad)
    # ext_ref : (8, ext_total) zero-bordered line buffer, laid out as
    #           [pad | img0 (Lpad) | pad | img1 (Lpad) | ... | pad]
    #           ext_total = span + 2*pad, span = nb*Lpad + (nb-1)*pad.

    mask = mask_ref[...]                       # (1, Lpad), broadcasts over channels
    w1 = w1_ref[...]
    b1 = b1_ref[...]
    b2 = b2_ref[...]
    b3 = b3_ref[...]

    # Re-zero only the (nb + 1) lane-aligned 128-wide gaps; the image
    # interiors are fully overwritten before every use.  Cheap and safe even
    # when the "parallel" batch axis is sharded across TensorCores.
    zero_gap = jnp.zeros((8, pad), jnp.float32)
    for g in range(nb + 1):
        start = g * (pad + lpad)
        ext_ref[:, start:start + pad] = zero_gap

    def img_off(b):
        return pad + b * (lpad + pad)

    # conv1 (1x1): one small (8,3)@(3,Lpad) contraction per image; masked
    # store into the zero-bordered line buffer at that image's lane offset.
    # TODO(synk): for nb > ~4 switch this (and the slice stores below) to
    # lax.fori_loop with pl.ds to bound vreg live ranges.
    for b in range(nb):
        y1 = jnp.dot(w1, xf_ref[b], preferred_element_type=jnp.float32) + b1
        ext_ref[:, img_off(b):img_off(b) + lpad] = y1 * mask

    def conv3x3(w_ref):
        # 9-tap accumulation directly from lane-shifted slices of ext_ref.
        # No (72, span) im2col intermediate is ever materialized; MXU has
        # enormous slack at M=8 so the 9x K=8 split is essentially free.
        acc = None
        for kh in range(3):
            for kw in range(3):
                s = pad + (kh - 1) * wp + (kw - 1)
                d = jnp.dot(w_ref[kh, kw], ext_ref[:, s:s + span],
                            preferred_element_type=jnp.float32)
                acc = d if acc is None else acc + d
        return acc

    # v1 = y1 + conv2(y1) + b2  (masked), written back per image so the
    # inter-image gaps stay zero for the next conv's taps.
    y1_span = ext_ref[:, pad:pad + span]
    v1 = y1_span + conv3x3(w2_ref) + b2
    for b in range(nb):
        lo = b * (lpad + pad)
        ext_ref[:, img_off(b):img_off(b) + lpad] = v1[:, lo:lo + lpad] * mask

    # v2 = conv(v1) + b3, then leaky-relu-style select (negative_slope static).
    v2 = conv3x3(w3_ref) + b3
    for b in range(nb):
        lo = b * (lpad + pad)
        vb = v2[:, lo:lo + lpad]
        out_ref[b] = jnp.where(vb > 0.0, vb, vb * ns)


@partial(jax.jit, static_argnames=("negative_slope", "block_n"))
def model_forward(x_nchw, params_oihw, *, negative_slope, block_n=None):
    """x_nchw: (N, 3, H, W) float32; params in PyTorch OIHW layout.

    Returns (N, 8, H+2, W+2) float32 (NCHW), matching the PyTorch module.
    """
    w1, b1, w2, b2, w3, b3 = params_oihw
    N, C, H, W = x_nchw.shape
    assert C == 3
    H2, W2 = H + 2, W + 2            # conv1 (k=1, pad=1) output spatial size
    Hp, Wp = H2, W2 + 1              # >=1 zero column between flattened rows
    L = Hp * Wp
    Lpad = _round_up(L, 128)         # flattened spatial, lane-dense
    pad = _round_up(Wp + 1, 128)     # lane-aligned zero border / inter-image gap
    assert pad >= Wp + 1 and pad % 128 == 0 and Lpad % 128 == 0

    x = x_nchw.astype(jnp.float32)

    # ---- batch blocking --------------------------------------------------
    if block_n is None:
        divisors = [d for d in range(1, N + 1) if N % d == 0]
        # Prefer grid >= 2 (both v7x TensorCores busy) with a modest per-step
        # unroll; on single-TC v5e/v6e the extra grid step is ~0.35 us.
        opts = ([d for d in divisors if d <= 4 and (N // d) >= 2]
                or [d for d in divisors if d <= 4])
        nb = max(opts)
    else:
        nb = block_n
    assert N % nb == 0
    # TODO(synk): for N == 1 on v7x, add a size-2 "parallel" lane-half split
    # so the second TensorCore is not idle.

    span = nb * Lpad + (nb - 1) * pad
    ext_total = span + 2 * pad

    # ---- parameter-sized layout prep (tiny, runs once under jit) ----------
    w1m = w1.astype(jnp.float32).reshape(8, 3)                        # (co, ci)
    w2t = jnp.transpose(w2.astype(jnp.float32), (2, 3, 0, 1))         # (kh,kw,co,ci)
    w3t = jnp.transpose(w3.astype(jnp.float32), (2, 3, 0, 1))
    b1c, b2c, b3c = (b.astype(jnp.float32).reshape(8, 1) for b in (b1, b2, b3))

    # ---- input: embed x at spatial offset (1,1) of the (Hp, Wp) frame and
    #      flatten the rows into the lane dimension (no transposes). ---------
    xe = jnp.pad(x, ((0, 0), (0, 0), (1, Hp - H - 1), (1, Wp - W - 1)))
    xf = jnp.pad(xe.reshape(N, C, L), ((0, 0), (0, 0), (0, Lpad - L)))

    # interior mask: 1 on the valid (H2, W2) pixels of the flattened frame.
    m2d = jnp.pad(jnp.ones((H2, W2), jnp.float32),
                  ((0, Hp - H2), (0, Wp - W2)))
    mask = jnp.pad(m2d.reshape(1, L), ((0, 0), (0, Lpad - L)))        # (1, Lpad)

    # ---- VMEM budget (only raised above the scoped default when needed) ---
    est_vmem = 4 * (2 * (3 + 8) * nb * Lpad     # double-buffered in/out blocks
                    + 2 * Lpad                  # mask
                    + 8 * ext_total             # line-buffer scratch
                    + 4 * 8 * span)             # accumulator/temporary headroom
    vmem_limit = None
    if est_vmem > 32 * 1024 * 1024:
        # v7x has only 64 MiB physical VMEM; stay safely below it.
        vmem_limit = int(min(est_vmem + (4 << 20), 56 * 1024 * 1024))
    # TODO(synk): for very large H*W, add a lane-chunk grid axis with a
    # (Wp+1)-lane halo instead of whole-image-in-lanes.

    kernel = partial(_fused_kernel, ns=float(negative_slope),
                     wp=Wp, lpad=Lpad, pad=pad, nb=nb, span=span)

    out_flat = pl.pallas_call(
        kernel,
        out_shape=jax.ShapeDtypeStruct((N, 8, Lpad), jnp.float32),
        grid=(N // nb,),
        in_specs=[
            pl.BlockSpec((nb, 3, Lpad), lambda n: (n, 0, 0)),   # x (flattened)
            pl.BlockSpec((1, Lpad), lambda n: (0, 0)),          # interior mask
            pl.BlockSpec((8, 3), lambda n: (0, 0)),             # w1
            pl.BlockSpec((8, 1), lambda n: (0, 0)),             # b1
            pl.BlockSpec((3, 3, 8, 8), lambda n: (0, 0, 0, 0)), # w2 (per-tap)
            pl.BlockSpec((8, 1), lambda n: (0, 0)),             # b2
            pl.BlockSpec((3, 3, 8, 8), lambda n: (0, 0, 0, 0)), # w3 (per-tap)
            pl.BlockSpec((8, 1), lambda n: (0, 0)),             # b3
        ],
        out_specs=pl.BlockSpec((nb, 8, Lpad), lambda n: (n, 0, 0)),
        scratch_shapes=[pltpu.VMEM((8, ext_total), jnp.float32)],
        compiler_params=pltpu.CompilerParams(
            dimension_semantics=("parallel",),
            vmem_limit_bytes=vmem_limit),
    )(xf, mask, w1m, b1c, w2t, b2c, w3t, b3c)

    # Un-flatten and drop the padding columns (small slice + bitcast reshape).
    # Note: padding lanes of out_flat hold unmasked leaky(b3 + garbage); they
    # are dropped here and must never be consumed from the flattened layout.
    out = out_flat[:, :, :L].reshape(N, 8, Hp, Wp)[:, :, :H2, :W2]
    return out


# ------------------------------ parameters ----------------------------------
def init_params(key):
    """Deterministic torch-like init. Returns OIHW params like the module."""
    def conv_init(key, cout, cin, k):
        k1, k2 = jax.random.split(key)
        bound = 1.0 / (cin * k * k) ** 0.5
        w = jax.random.uniform(k1, (cout, cin, k, k), jnp.float32, -bound, bound)
        b = jax.random.uniform(k2, (cout,), jnp.float32, -bound, bound)
        return w, b

    k1, k2, k3 = jax.random.split(key, 3)
    w3_, b3_ = conv_init(k1, 8, 8, 3)   # self.conv
    w1_, b1_ = conv_init(k2, 8, 3, 1)   # self.conv1
    w2_, b2_ = conv_init(k3, 8, 8, 3)   # self.conv2
    return (w1_, b1_, w2_, b2_, w3_, b3_)


def ref_forward(x, params_oihw, negative_slope):
    """Pure-JAX (XLA) reference in NCHW, mirroring the PyTorch module."""
    w1, b1, w2, b2, w3, b3 = params_oihw

    def conv(x, w, b, pad):
        y = jax.lax.conv_general_dilated(
            x, w, window_strides=(1, 1), padding=[(pad, pad), (pad, pad)],
            dimension_numbers=("NCHW", "OIHW", "NCHW"),
            precision=jax.lax.Precision.HIGHEST)
        return y + b.reshape(1, -1, 1, 1)

    v1 = conv(x, w1, b1, 1)
    v1 = v1 + conv(v1, w2, b2, 1)
    v2 = conv(v1, w3, b3, 1)
    return jnp.where(v2 > 0, v2, v2 * negative_slope)


if __name__ == "__main__":
    key = jax.random.PRNGKey(0)
    k_x, k_p = jax.random.split(key)

    # Small shapes consistent with the module (conv1 expects 3 input channels).
    N, C, H, W = 2, 3, 16, 16
    x = jax.random.normal(k_x, (N, C, H, W), jnp.float32)
    negative_slope = 0.2

    params = init_params(k_p)

    out = model_forward(x, params, negative_slope=negative_slope)
    out = jax.block_until_ready(out)

    ref = ref_forward(x, params, negative_slope)
    assert out.shape == (N, 8, H + 2, W + 2), out.shape
    max_err = float(jnp.max(jnp.abs(out - ref)))
    assert jnp.allclose(out, ref, atol=2e-3, rtol=2e-3), max_err

    print("KERNEL_OK")
</pallas_src>

<mosaic_0001>
module attributes {stable_mosaic.version = 11 : i64} {
  func.func @_fused_kernel(%arg0: i32, %arg1: memref<1x3x384xf32, #tpu.memory_space<vmem>>, %arg2: memref<1x384xf32, #tpu.memory_space<vmem>>, %arg3: memref<8x3xf32, #tpu.memory_space<vmem>>, %arg4: memref<8x1xf32, #tpu.memory_space<vmem>>, %arg5: memref<3x3x8x8xf32, #tpu.memory_space<vmem>>, %arg6: memref<8x1xf32, #tpu.memory_space<vmem>>, %arg7: memref<3x3x8x8xf32, #tpu.memory_space<vmem>>, %arg8: memref<8x1xf32, #tpu.memory_space<vmem>>, %arg9: memref<1x8x384xf32, #tpu.memory_space<vmem>>, %arg10: memref<8x640xf32, #tpu.memory_space<vmem>>) attributes {dimension_semantics = [#tpu.dimension_semantics<parallel>], iteration_bounds = array<i64: 2>, scalar_prefetch = 0 : i64, scratch_operands = 1 : i64, tpu.core_type = #tpu.core_type<tc>, window_params = [{transform_indices = @transform_0, window_bounds = array<i64: 1, 3, 384>}, {pipeline_mode = #tpu.pipeline_mode<synchronous>, transform_indices = @transform_1, window_bounds = array<i64: 1, 384>}, {pipeline_mode = #tpu.pipeline_mode<synchronous>, transform_indices = @transform_2, window_bounds = array<i64: 8, 3>}, {pipeline_mode = #tpu.pipeline_mode<synchronous>, transform_indices = @transform_3, window_bounds = array<i64: 8, 1>}, {pipeline_mode = #tpu.pipeline_mode<synchronous>, transform_indices = @transform_4, window_bounds = array<i64: 3, 3, 8, 8>}, {pipeline_mode = #tpu.pipeline_mode<synchronous>, transform_indices = @transform_5, window_bounds = array<i64: 8, 1>}, {pipeline_mode = #tpu.pipeline_mode<synchronous>, transform_indices = @transform_6, window_bounds = array<i64: 3, 3, 8, 8>}, {pipeline_mode = #tpu.pipeline_mode<synchronous>, transform_indices = @transform_7, window_bounds = array<i64: 8, 1>}, {transform_indices = @transform_8, window_bounds = array<i64: 1, 8, 384>}]} {
    %c0 = arith.constant 0 : index
    %c0_0 = arith.constant 0 : index
    %0 = vector.load %arg2[%c0, %c0_0] : memref<1x384xf32, #tpu.memory_space<vmem>>, vector<1x384xf32>
    %c0_1 = arith.constant 0 : index
    %c0_2 = arith.constant 0 : index
    %1 = vector.load %arg3[%c0_1, %c0_2] : memref<8x3xf32, #tpu.memory_space<vmem>>, vector<8x3xf32>
    %c0_3 = arith.constant 0 : index
    %c0_4 = arith.constant 0 : index
    %2 = vector.load %arg4[%c0_3, %c0_4] : memref<8x1xf32, #tpu.memory_space<vmem>>, vector<8x1xf32>
    %c0_5 = arith.constant 0 : index
    %c0_6 = arith.constant 0 : index
    %3 = vector.load %arg6[%c0_5, %c0_6] : memref<8x1xf32, #tpu.memory_space<vmem>>, vector<8x1xf32>
    %c0_7 = arith.constant 0 : index
    %c0_8 = arith.constant 0 : index
    %4 = vector.load %arg8[%c0_7, %c0_8] : memref<8x1xf32, #tpu.memory_space<vmem>>, vector<8x1xf32>
    %cst = arith.constant 0.000000e+00 : f32
    %5 = vector.broadcast %cst : f32 to vector<8x128xf32>
    %c0_9 = arith.constant 0 : index
    %c0_10 = arith.constant 0 : index
    %6 = vector.load %arg10[%c0_9, %c0_10] : memref<8x640xf32, #tpu.memory_space<vmem>>, vector<8x128xf32>
    tpu.vector_store %arg10[%c0_9, %c0_10], %5 {strides = array<i32>} : memref<8x640xf32, #tpu.memory_space<vmem>>, vector<8x128xf32>,
    %c0_11 = arith.constant 0 : index
    %c512 = arith.constant 512 : index
    %7 = vector.load %arg10[%c0_11, %c512] : memref<8x640xf32, #tpu.memory_space<vmem>>, vector<8x128xf32>
    tpu.vector_store %arg10[%c0_11, %c512], %5 {strides = array<i32>} : memref<8x640xf32, #tpu.memory_space<vmem>>, vector<8x128xf32>,
    %c0_12 = arith.constant 0 : index
    %c0_13 = arith.constant 0 : index
    %c0_14 = arith.constant 0 : index
    %8 = vector.load %arg1[%c0_12, %c0_13, %c0_14] : memref<1x3x384xf32, #tpu.memory_space<vmem>>, vector<1x3x384xf32>
    %9 = vector.shape_cast %8 : vector<1x3x384xf32> to vector<3x384xf32>
    %cst_15 = arith.constant dense<0.000000e+00> : vector<8x384xf32>
    %10 = tpu.matmul %1, %9, %cst_15 {dimension_numbers = #tpu.dot_dimension_numbers<[1], [0], [0], [1], [0, 0, 1, 1], [], []>} : vector<8x3xf32>, vector<3x384xf32>, vector<8x384xf32> -> vector<8x384xf32>
    %11 = vector.broadcast %2 : vector<8x1xf32> to vector<8x384xf32>
    %12 = arith.addf %10, %11 : vector<8x384xf32>
    %13 = vector.broadcast %0 : vector<1x384xf32> to vector<8x384xf32>
    %14 = arith.mulf %12, %13 : vector<8x384xf32>
    %c0_16 = arith.constant 0 : index
    %c128 = arith.constant 128 : index
    %15 = vector.load %arg10[%c0_16, %c128] : memref<8x640xf32, #tpu.memory_space<vmem>>, vector<8x384xf32>
    tpu.vector_store %arg10[%c0_16, %c128], %14 {strides = array<i32>} : memref<8x640xf32, #tpu.memory_space<vmem>>, vector<8x384xf32>,
    %c0_17 = arith.constant 0 : index
    %c128_18 = arith.constant 128 : index
    %16 = vector.load %arg10[%c0_17, %c128_18] : memref<8x640xf32, #tpu.memory_space<vmem>>, vector<8x384xf32>
    %c0_19 = arith.constant 0 : index
    %c0_20 = arith.constant 0 : index
    %c0_21 = arith.constant 0 : index
    %c0_22 = arith.constant 0 : index
    %17 = vector.load %arg5[%c0_19, %c0_20, %c0_21, %c0_22] : memref<3x3x8x8xf32, #tpu.memory_space<vmem>>, vector<1x1x8x8xf32>
    %18 = vector.shape_cast %17 : vector<1x1x8x8xf32> to vector<8x8xf32>
    %c0_23 = arith.constant 0 : index
    %c108 = arith.constant 108 : index
    %19 = vector.load %arg10[%c0_23, %c108] : memref<8x640xf32, #tpu.memory_space<vmem>>, vector<8x384xf32>
    %cst_24 = arith.constant dense<0.000000e+00> : vector<8x384xf32>
    %20 = tpu.matmul %18, %19, %cst_24 {dimension_numbers = #tpu.dot_dimension_numbers<[1], [0], [0], [1], [0, 0, 1, 1], [], []>} : vector<8x8xf32>, vector<8x384xf32>, vector<8x384xf32> -> vector<8x384xf32>
    %c0_25 = arith.constant 0 : index
    %c1 = arith.constant 1 : index
    %c0_26 = arith.constant 0 : index
    %c0_27 = arith.constant 0 : index
    %21 = vector.load %arg5[%c0_25, %c1, %c0_26, %c0_27] : memref<3x3x8x8xf32, #tpu.memory_space<vmem>>, vector<1x1x8x8xf32>
    %22 = vector.shape_cast %21 : vector<1x1x8x8xf32> to vector<8x8xf32>
    %c0_28 = arith.constant 0 : index
    %c109 = arith.constant 109 : index
    %23 = vector.load %arg10[%c0_28, %c109] : memref<8x640xf32, #tpu.memory_space<vmem>>, vector<8x384xf32>
    %cst_29 = arith.constant dense<0.000000e+00> : vector<8x384xf32>
    %24 = tpu.matmul %22, %23, %cst_29 {dimension_numbers = #tpu.dot_dimension_numbers<[1], [0], [0], [1], [0, 0, 1, 1], [], []>} : vector<8x8xf32>, vector<8x384xf32>, vector<8x384xf32> -> vector<8x384xf32>
    %25 = arith.addf %20, %24 : vector<8x384xf32>
    %c0_30 = arith.constant 0 : index
    %c2 = arith.constant 2 : index
    %c0_31 = arith.constant 0 : index
    %c0_32 = arith.constant 0 : index
    %26 = vector.load %arg5[%c0_30, %c2, %c0_31, %c0_32] : memref<3x3x8x8xf32, #tpu.memory_space<vmem>>, vector<1x1x8x8xf32>
    %27 = vector.shape_cast %26 : vector<1x1x8x8xf32> to vector<8x8xf32>
    %c0_33 = arith.constant 0 : index
    %c110 = arith.constant 110 : index
    %28 = vector.load %arg10[%c0_33, %c110] : memref<8x640xf32, #tpu.memory_space<vmem>>, vector<8x384xf32>
    %cst_34 = arith.constant dense<0.000000e+00> : vector<8x384xf32>
    %29 = tpu.matmul %27, %28, %cst_34 {dimension_numbers = #tpu.dot_dimension_numbers<[1], [0], [0], [1], [0, 0, 1, 1], [], []>} : vector<8x8xf32>, vector<8x384xf32>, vector<8x384xf32> -> vector<8x384xf32>
    %30 = arith.addf %25, %29 : vector<8x384xf32>
    %c1_35 = arith.constant 1 : index
    %c0_36 = arith.constant 0 : index
    %c0_37 = arith.constant 0 : index
    %c0_38 = arith.constant 0 : index
    %31 = vector.load %arg5[%c1_35, %c0_36, %c0_37, %c0_38] : memref<3x3x8x8xf32, #tpu.memory_space<vmem>>, vector<1x1x8x8xf32>
    %32 = vector.shape_cast %31 : vector<1x1x8x8xf32> to vector<8x8xf32>
    %c0_39 = arith.constant 0 : index
    %c127 = arith.constant 127 : index
    %33 = vector.load %arg10[%c0_39, %c127] : memref<8x640xf32, #tpu.memory_space<vmem>>, vector<8x384xf32>
    %cst_40 = arith.constant dense<0.000000e+00> : vector<8x384xf32>
    %34 = tpu.matmul %32, %33, %cst_40 {dimension_numbers = #tpu.dot_dimension_numbers<[1], [0], [0], [1], [0, 0, 1, 1], [], []>} : vector<8x8xf32>, vector<8x384xf32>, vector<8x384xf32> -> vector<8x384xf32>
    %35 = arith.addf %30, %34 : vector<8x384xf32>
    %c1_41 = arith.constant 1 : index
    %c1_42 = arith.constant 1 : index
    %c0_43 = arith.constant 0 : index
    %c0_44 = arith.constant 0 : index
    %36 = vector.load %arg5[%c1_41, %c1_42, %c0_43, %c0_44] : memref<3x3x8x8xf32, #tpu.memory_space<vmem>>, vector<1x1x8x8xf32>
    %37 = vector.shape_cast %36 : vector<1x1x8x8xf32> to vector<8x8xf32>
    %c0_45 = arith.constant 0 : index
    %c128_46 = arith.constant 128 : index
    %38 = vector.load %arg10[%c0_45, %c128_46] : memref<8x640xf32, #tpu.memory_space<vmem>>, vector<8x384xf32>
    %cst_47 = arith.constant dense<0.000000e+00> : vector<8x384xf32>
    %39 = tpu.matmul %37, %38, %cst_47 {dimension_numbers = #tpu.dot_dimension_numbers<[1], [0], [0], [1], [0, 0, 1, 1], [], []>} : vector<8x8xf32>, vector<8x384xf32>, vector<8x384xf32> -> vector<8x384xf32>
    %40 = arith.addf %35, %39 : vector<8x384xf32>
    %c1_48 = arith.constant 1 : index
    %c2_49 = arith.constant 2 : index
    %c0_50 = arith.constant 0 : index
    %c0_51 = arith.constant 0 : index
    %41 = vector.load %arg5[%c1_48, %c2_49, %c0_50, %c0_51] : memref<3x3x8x8xf32, #tpu.memory_space<vmem>>, vector<1x1x8x8xf32>
    %42 = vector.shape_cast %41 : vector<1x1x8x8xf32> to vector<8x8xf32>
    %c0_52 = arith.constant 0 : index
    %c129 = arith.constant 129 : index
    %43 = vector.load %arg10[%c0_52, %c129] : memref<8x640xf32, #tpu.memory_space<vmem>>, vector<8x384xf32>
    %cst_53 = arith.constant dense<0.000000e+00> : vector<8x384xf32>
    %44 = tpu.matmul %42, %43, %cst_53 {dimension_numbers = #tpu.dot_dimension_numbers<[1], [0], [0], [1], [0, 0, 1, 1], [], []>} : vector<8x8xf32>, vector<8x384xf32>, vector<8x384xf32> -> vector<8x384xf32>
    %45 = arith.addf %40, %44 : vector<8x384xf32>
    %c2_54 = arith.constant 2 : index
    %c0_55 = arith.constant 0 : index
    %c0_56 = arith.constant 0 : index
    %c0_57 = arith.constant 0 : index
    %46 = vector.load %arg5[%c2_54, %c0_55, %c0_56, %c0_57] : memref<3x3x8x8xf32, #tpu.memory_space<vmem>>, vector<1x1x8x8xf32>
    %47 = vector.shape_cast %46 : vector<1x1x8x8xf32> to vector<8x8xf32>
    %c0_58 = arith.constant 0 : index
    %c146 = arith.constant 146 : index
    %48 = vector.load %arg10[%c0_58, %c146] : memref<8x640xf32, #tpu.memory_space<vmem>>, vector<8x384xf32>
    %cst_59 = arith.constant dense<0.000000e+00> : vector<8x384xf32>
    %49 = tpu.matmul %47, %48, %cst_59 {dimension_numbers = #tpu.dot_dimension_numbers<[1], [0], [0], [1], [0, 0, 1, 1], [], []>} : vector<8x8xf32>, vector<8x384xf32>, vector<8x384xf32> -> vector<8x384xf32>
    %50 = arith.addf %45, %49 : vector<8x384xf32>
    %c2_60 = arith.constant 2 : index
    %c1_61 = arith.constant 1 : index
    %c0_62 = arith.constant 0 : index
    %c0_63 = arith.constant 0 : index
    %51 = vector.load %arg5[%c2_60, %c1_61, %c0_62, %c0_63] : memref<3x3x8x8xf32, #tpu.memory_space<vmem>>, vector<1x1x8x8xf32>
    %52 = vector.shape_cast %51 : vector<1x1x8x8xf32> to vector<8x8xf32>
    %c0_64 = arith.constant 0 : index
    %c147 = arith.constant 147 : index
    %53 = vector.load %arg10[%c0_64, %c147] : memref<8x640xf32, #tpu.memory_space<vmem>>, vector<8x384xf32>
    %cst_65 = arith.constant dense<0.000000e+00> : vector<8x384xf32>
    %54 = tpu.matmul %52, %53, %cst_65 {dimension_numbers = #tpu.dot_dimension_numbers<[1], [0], [0], [1], [0, 0, 1, 1], [], []>} : vector<8x8xf32>, vector<8x384xf32>, vector<8x384xf32> -> vector<8x384xf32>
    %55 = arith.addf %50, %54 : vector<8x384xf32>
    %c2_66 = arith.constant 2 : index
    %c2_67 = arith.constant 2 : index
    %c0_68 = arith.constant 0 : index
    %c0_69 = arith.constant 0 : index
    %56 = vector.load %arg5[%c2_66, %c2_67, %c0_68, %c0_69] : memref<3x3x8x8xf32, #tpu.memory_space<vmem>>, vector<1x1x8x8xf32>
    %57 = vector.shape_cast %56 : vector<1x1x8x8xf32> to vector<8x8xf32>
    %c0_70 = arith.constant 0 : index
    %c148 = arith.constant 148 : index
    %58 = vector.load %arg10[%c0_70, %c148] : memref<8x640xf32, #tpu.memory_space<vmem>>, vector<8x384xf32>
    %cst_71 = arith.constant dense<0.000000e+00> : vector<8x384xf32>
    %59 = tpu.matmul %57, %58, %cst_71 {dimension_numbers = #tpu.dot_dimension_numbers<[1], [0], [0], [1], [0, 0, 1, 1], [], []>} : vector<8x8xf32>, vector<8x384xf32>, vector<8x384xf32> -> vector<8x384xf32>
    %60 = arith.addf %55, %59 : vector<8x384xf32>
    %61 = arith.addf %16, %60 : vector<8x384xf32>
    %62 = vector.broadcast %3 : vector<8x1xf32> to vector<8x384xf32>
    %63 = arith.addf %61, %62 : vector<8x384xf32>
    %64 = vector.broadcast %0 : vector<1x384xf32> to vector<8x384xf32>
    %65 = arith.mulf %63, %64 : vector<8x384xf32>
    %c0_72 = arith.constant 0 : index
    %c128_73 = arith.constant 128 : index
    %66 = vector.load %arg10[%c0_72, %c128_73] : memref<8x640xf32, #tpu.memory_space<vmem>>, vector<8x384xf32>
    tpu.vector_store %arg10[%c0_72, %c128_73], %65 {strides = array<i32>} : memref<8x640xf32, #tpu.memory_space<vmem>>, vector<8x384xf32>,
    %c0_74 = arith.constant 0 : index
    %c0_75 = arith.constant 0 : index
    %c0_76 = arith.constant 0 : index
    %c0_77 = arith.constant 0 : index
    %67 = vector.load %arg7[%c0_74, %c0_75, %c0_76, %c0_77] : memref<3x3x8x8xf32, #tpu.memory_space<vmem>>, vector<1x1x8x8xf32>
    %68 = vector.shape_cast %67 : vector<1x1x8x8xf32> to vector<8x8xf32>
    %c0_78 = arith.constant 0 : index
    %c108_79 = arith.constant 108 : index
    %69 = vector.load %arg10[%c0_78, %c108_79] : memref<8x640xf32, #tpu.memory_space<vmem>>, vector<8x384xf32>
    %cst_80 = arith.constant dense<0.000000e+00> : vector<8x384xf32>
    %70 = tpu.matmul %68, %69, %cst_80 {dimension_numbers = #tpu.dot_dimension_numbers<[1], [0], [0], [1], [0, 0, 1, 1], [], []>} : vector<8x8xf32>, vector<8x384xf32>, vector<8x384xf32> -> vector<8x384xf32>
    %c0_81 = arith.constant 0 : index
    %c1_82 = arith.constant 1 : index
    %c0_83 = arith.constant 0 : index
    %c0_84 = arith.constant 0 : index
    %71 = vector.load %arg7[%c0_81, %c1_82, %c0_83, %c0_84] : memref<3x3x8x8xf32, #tpu.memory_space<vmem>>, vector<1x1x8x8xf32>
    %72 = vector.shape_cast %71 : vector<1x1x8x8xf32> to vector<8x8xf32>
    %c0_85 = arith.constant 0 : index
    %c109_86 = arith.constant 109 : index
    %73 = vector.load %arg10[%c0_85, %c109_86] : memref<8x640xf32, #tpu.memory_space<vmem>>, vector<8x384xf32>
    %cst_87 = arith.constant dense<0.000000e+00> : vector<8x384xf32>
    %74 = tpu.matmul %72, %73, %cst_87 {dimension_numbers = #tpu.dot_dimension_numbers<[1], [0], [0], [1], [0, 0, 1, 1], [], []>} : vector<8x8xf32>, vector<8x384xf32>, vector<8x384xf32> -> vector<8x384xf32>
    %75 = arith.addf %70, %74 : vector<8x384xf32>
    %c0_88 = arith.constant 0 : index
    %c2_89 = arith.constant 2 : index
    %c0_90 = arith.constant 0 : index
    %c0_91 = arith.constant 0 : index
    %76 = vector.load %arg7[%c0_88, %c2_89, %c0_90, %c0_91] : memref<3x3x8x8xf32, #tpu.memory_space<vmem>>, vector<1x1x8x8xf32>
    %77 = vector.shape_cast %76 : vector<1x1x8x8xf32> to vector<8x8xf32>
    %c0_92 = arith.constant 0 : index
    %c110_93 = arith.constant 110 : index
    %78 = vector.load %arg10[%c0_92, %c110_93] : memref<8x640xf32, #tpu.memory_space<vmem>>, vector<8x384xf32>
    %cst_94 = arith.constant dense<0.000000e+00> : vector<8x384xf32>
    %79 = tpu.matmul %77, %78, %cst_94 {dimension_numbers = #tpu.dot_dimension_numbers<[1], [0], [0], [1], [0, 0, 1, 1], [], []>} : vector<8x8xf32>, vector<8x384xf32>, vector<8x384xf32> -> vector<8x384xf32>
    %80 = arith.addf %75, %79 : vector<8x384xf32>
    %c1_95 = arith.constant 1 : index
    %c0_96 = arith.constant 0 : index
    %c0_97 = arith.constant 0 : index
    %c0_98 = arith.constant 0 : index
    %81 = vector.load %arg7[%c1_95, %c0_96, %c0_97, %c0_98] : memref<3x3x8x8xf32, #tpu.memory_space<vmem>>, vector<1x1x8x8xf32>
    %82 = vector.shape_cast %81 : vector<1x1x8x8xf32> to vector<8x8xf32>
    %c0_99 = arith.constant 0 : index
    %c127_100 = arith.constant 127 : index
    %83 = vector.load %arg10[%c0_99, %c127_100] : memref<8x640xf32, #tpu.memory_space<vmem>>, vector<8x384xf32>
    %cst_101 = arith.constant dense<0.000000e+00> : vector<8x384xf32>
    %84 = tpu.matmul %82, %83, %cst_101 {dimension_numbers = #tpu.dot_dimension_numbers<[1], [0], [0], [1], [0, 0, 1, 1], [], []>} : vector<8x8xf32>, vector<8x384xf32>, vector<8x384xf32> -> vector<8x384xf32>
    %85 = arith.addf %80, %84 : vector<8x384xf32>
    %c1_102 = arith.constant 1 : index
    %c1_103 = arith.constant 1 : index
    %c0_104 = arith.constant 0 : index
    %c0_105 = arith.constant 0 : index
    %86 = vector.load %arg7[%c1_102, %c1_103, %c0_104, %c0_105] : memref<3x3x8x8xf32, #tpu.memory_space<vmem>>, vector<1x1x8x8xf32>
    %87 = vector.shape_cast %86 : vector<1x1x8x8xf32> to vector<8x8xf32>
    %c0_106 = arith.constant 0 : index
    %c128_107 = arith.constant 128 : index
    %88 = vector.load %arg10[%c0_106, %c128_107] : memref<8x640xf32, #tpu.memory_space<vmem>>, vector<8x384xf32>
    %cst_108 = arith.constant dense<0.000000e+00> : vector<8x384xf32>
    %89 = tpu.matmul %87, %88, %cst_108 {dimension_numbers = #tpu.dot_dimension_numbers<[1], [0], [0], [1], [0, 0, 1, 1], [], []>} : vector<8x8xf32>, vector<8x384xf32>, vector<8x384xf32> -> vector<8x384xf32>
    %90 = arith.addf %85, %89 : vector<8x384xf32>
    %c1_109 = arith.constant 1 : index
    %c2_110 = arith.constant 2 : index
    %c0_111 = arith.constant 0 : index
    %c0_112 = arith.constant 0 : index
    %91 = vector.load %arg7[%c1_109, %c2_110, %c0_111, %c0_112] : memref<3x3x8x8xf32, #tpu.memory_space<vmem>>, vector<1x1x8x8xf32>
    %92 = vector.shape_cast %91 : vector<1x1x8x8xf32> to vector<8x8xf32>
    %c0_113 = arith.constant 0 : index
    %c129_114 = arith.constant 129 : index
    %93 = vector.load %arg10[%c0_113, %c129_114] : memref<8x640xf32, #tpu.memory_space<vmem>>, vector<8x384xf32>
    %cst_115 = arith.constant dense<0.000000e+00> : vector<8x384xf32>
    %94 = tpu.matmul %92, %93, %cst_115 {dimension_numbers = #tpu.dot_dimension_numbers<[1], [0], [0], [1], [0, 0, 1, 1], [], []>} : vector<8x8xf32>, vector<8x384xf32>, vector<8x384xf32> -> vector<8x384xf32>
    %95 = arith.addf %90, %94 : vector<8x384xf32>
    %c2_116 = arith.constant 2 : index
    %c0_117 = arith.constant 0 : index
    %c0_118 = arith.constant 0 : index
    %c0_119 = arith.constant 0 : index
    %96 = vector.load %arg7[%c2_116, %c0_117, %c0_118, %c0_119] : memref<3x3x8x8xf32, #tpu.memory_space<vmem>>, vector<1x1x8x8xf32>
    %97 = vector.shape_cast %96 : vector<1x1x8x8xf32> to vector<8x8xf32>
    %c0_120 = arith.constant 0 : index
    %c146_121 = arith.constant 146 : index
    %98 = vector.load %arg10[%c0_120, %c146_121] : memref<8x640xf32, #tpu.memory_space<vmem>>, vector<8x384xf32>
    %cst_122 = arith.constant dense<0.000000e+00> : vector<8x384xf32>
    %99 = tpu.matmul %97, %98, %cst_122 {dimension_numbers = #tpu.dot_dimension_numbers<[1], [0], [0], [1], [0, 0, 1, 1], [], []>} : vector<8x8xf32>, vector<8x384xf32>, vector<8x384xf32> -> vector<8x384xf32>
    %100 = arith.addf %95, %99 : vector<8x384xf32>
    %c2_123 = arith.constant 2 : index
    %c1_124 = arith.constant 1 : index
    %c0_125 = arith.constant 0 : index
    %c0_126 = arith.constant 0 : index
    %101 = vector.load %arg7[%c2_123, %c1_124, %c0_125, %c0_126] : memref<3x3x8x8xf32, #tpu.memory_space<vmem>>, vector<1x1x8x8xf32>
    %102 = vector.shape_cast %101 : vector<1x1x8x8xf32> to vector<8x8xf32>
    %c0_127 = arith.constant 0 : index
    %c147_128 = arith.constant 147 : index
    %103 = vector.load %arg10[%c0_127, %c147_128] : memref<8x640xf32, #tpu.memory_space<vmem>>, vector<8x384xf32>
    %cst_129 = arith.constant dense<0.000000e+00> : vector<8x384xf32>
    %104 = tpu.matmul %102, %103, %cst_129 {dimension_numbers = #tpu.dot_dimension_numbers<[1], [0], [0], [1], [0, 0, 1, 1], [], []>} : vector<8x8xf32>, vector<8x384xf32>, vector<8x384xf32> -> vector<8x384xf32>
    %105 = arith.addf %100, %104 : vector<8x384xf32>
    %c2_130 = arith.constant 2 : index
    %c2_131 = arith.constant 2 : index
    %c0_132 = arith.constant 0 : index
    %c0_133 = arith.constant 0 : index
    %106 = vector.load %arg7[%c2_130, %c2_131, %c0_132, %c0_133] : memref<3x3x8x8xf32, #tpu.memory_space<vmem>>, vector<1x1x8x8xf32>
    %107 = vector.shape_cast %106 : vector<1x1x8x8xf32> to vector<8x8xf32>
    %c0_134 = arith.constant 0 : index
    %c148_135 = arith.constant 148 : index
    %108 = vector.load %arg10[%c0_134, %c148_135] : memref<8x640xf32, #tpu.memory_space<vmem>>, vector<8x384xf32>
    %cst_136 = arith.constant dense<0.000000e+00> : vector<8x384xf32>
    %109 = tpu.matmul %107, %108, %cst_136 {dimension_numbers = #tpu.dot_dimension_numbers<[1], [0], [0], [1], [0, 0, 1, 1], [], []>} : vector<8x8xf32>, vector<8x384xf32>, vector<8x384xf32> -> vector<8x384xf32>
    %110 = arith.addf %105, %109 : vector<8x384xf32>
    %111 = vector.broadcast %4 : vector<8x1xf32> to vector<8x384xf32>
    %112 = arith.addf %110, %111 : vector<8x384xf32>
    %cst_137 = arith.constant 0.000000e+00 : f32
    %113 = vector.broadcast %cst_137 : f32 to vector<8x384xf32>
    %114 = arith.cmpf ogt, %112, %113 : vector<8x384xf32>
    %cst_138 = arith.constant 2.000000e-01 : f32
    %115 = vector.broadcast %cst_138 : f32 to vector<8x384xf32>
    %116 = arith.mulf %112, %115 : vector<8x384xf32>
    %117 = arith.select %114, %112, %116 : vector<8x384xi1>, vector<8x384xf32>
    %c0_139 = arith.constant 0 : index
    %c0_140 = arith.constant 0 : index
    %c0_141 = arith.constant 0 : index
    %118 = vector.load %arg9[%c0_139, %c0_140, %c0_141] : memref<1x8x384xf32, #tpu.memory_space<vmem>>, vector<1x8x384xf32>
    %119 = vector.shape_cast %118 : vector<1x8x384xf32> to vector<8x384xf32>
    %120 = vector.shape_cast %117 : vector<8x384xf32> to vector<1x8x384xf32>
    tpu.vector_store %arg9[%c0_139, %c0_140, %c0_141], %120 {strides = array<i32>} : memref<1x8x384xf32, #tpu.memory_space<vmem>>, vector<1x8x384xf32>,
    return
  }
  func.func @transform_0(%arg0: i32) -> (i32, i32, i32) {
    %c0_i32 = arith.constant 0 : i32
    %c0_i32_0 = arith.constant 0 : i32
    %c0_i32_1 = arith.constant 0 : i32
    return %arg0, %c0_i32, %c0_i32_0 : i32, i32, i32
  }
  func.func @transform_1(%arg0: i32) -> (i32, i32) {
    %c0_i32 = arith.constant 0 : i32
    %c0_i32_0 = arith.constant 0 : i32
    %c0_i32_1 = arith.constant 0 : i32
    return %c0_i32, %c0_i32_0 : i32, i32
  }
  func.func @transform_2(%arg0: i32) -> (i32, i32) {
    %c0_i32 = arith.constant 0 : i32
    %c0_i32_0 = arith.constant 0 : i32
    %c0_i32_1 = arith.constant 0 : i32
    return %c0_i32, %c0_i32_0 : i32, i32
  }
  func.func @transform_3(%arg0: i32) -> (i32, i32) {
    %c0_i32 = arith.constant 0 : i32
    %c0_i32_0 = arith.constant 0 : i32
    %c0_i32_1 = arith.constant 0 : i32
    return %c0_i32, %c0_i32_0 : i32, i32
  }
  func.func @transform_4(%arg0: i32) -> (i32, i32, i32, i32) {
    %c0_i32 = arith.constant 0 : i32
    %c0_i32_0 = arith.constant 0 : i32
    %c0_i32_1 = arith.constant 0 : i32
    %c0_i32_2 = arith.constant 0 : i32
    %c0_i32_3 = arith.constant 0 : i32
    return %c0_i32, %c0_i32_0, %c0_i32_1, %c0_i32_2 : i32, i32, i32, i32
  }
  func.func @transform_5(%arg0: i32) -> (i32, i32) {
    %c0_i32 = arith.constant 0 : i32
    %c0_i32_0 = arith.constant 0 : i32
    %c0_i32_1 = arith.constant 0 : i32
    return %c0_i32, %c0_i32_0 : i32, i32
  }
  func.func @transform_6(%arg0: i32) -> (i32, i32, i32, i32) {
    %c0_i32 = arith.constant 0 : i32
    %c0_i32_0 = arith.constant 0 : i32
    %c0_i32_1 = arith.constant 0 : i32
    %c0_i32_2 = arith.constant 0 : i32
    %c0_i32_3 = arith.constant 0 : i32
    return %c0_i32, %c0_i32_0, %c0_i32_1, %c0_i32_2 : i32, i32, i32, i32
  }
  func.func @transform_7(%arg0: i32) -> (i32, i32) {
    %c0_i32 = arith.constant 0 : i32
    %c0_i32_0 = arith.constant 0 : i32
    %c0_i32_1 = arith.constant 0 : i32
    return %c0_i32, %c0_i32_0 : i32, i32
  }
  func.func @transform_8(%arg0: i32) -> (i32, i32, i32) {
    %c0_i32 = arith.constant 0 : i32
    %c0_i32_0 = arith.constant 0 : i32
    %c0_i32_1 = arith.constant 0 : i32
    return %arg0, %c0_i32, %c0_i32_0 : i32, i32, i32
  }
}

</mosaic_0001>

<bundles_post_ra>
// kernel: model_forward.1
= control target key start
LH: loop header
LB: loop body
LE: loop exit
PB: predicated region body
PF: predicated region fallthrough
CT: control target
= control target key end

     0   :  { %s2294_s27 = smov 0   ;;  %s2582_s0 = inlined_call_operand.vmem [shape: f32[2,3,384], index: 0, kind: input, shape index: {}]   ;;  %s2583_s1 = inlined_call_operand.vmem [shape: f32[1,384], index: 1, kind: input, shape index: {}]   ;;  %s2584_s2 = inlined_call_operand.vmem [shape: f32[8,3], index: 2, kind: input, shape index: {}]   ;;  %s2585_s3 = inlined_call_operand.vmem [shape: f32[8,1], index: 3, kind: input, shape index: {}]   ;;  %s2586_s4 = inlined_call_operand.vmem [shape: f32[3,3,8,8], index: 4, kind: input, shape index: {}]   ;;  %s2587_s5 = inlined_call_operand.vmem [shape: f32[8,1], index: 5, kind: input, shape index: {}]   ;;  %s2588_s6 = inlined_call_operand.vmem [shape: f32[3,3,8,8], index: 6, kind: input, shape index: {}]   ;;  %s2589_s7 = inlined_call_operand.vmem [shape: f32[8,1], index: 7, kind: input, shape index: {}]   ;;  %s2590_s8 = inlined_call_operand.vmem [shape: f32[2,8,384], index: 8, kind: output, shape index: {}]  }
   0x1 LB: > { %s1979_s28 = sadd.s32 4294967295, %s2237_s27   ;;  %p1983_p0 = scmp.ge.s32.totalorder %s2237_s27, 1  ;;  %s2237_s27 = sphi %s2294_s27, %s18_s27  }
   0x2   : > { %p262_p1 = scmp.lt.s32.totalorder %s2237_s27, 3 }
   0x4   : > { %p263_p2 = pnand %p1983_p0, %p262_p1 }
   0x5   : > { %p296_p3 = scmp.lt.s32.totalorder (!%p263_p2), %s1979_s28, 1  ;;  %s2241_s17 = smov (!%p263_p2), 19  }
   0x6   : > { %266 = sbr.rel (%p263_p2) target bundleno = 783 (0x30f), region = 52  ;;  %s2242_s18 = smov (!%p263_p2), 20  }
   0x7   : > { %s2243_s19 = smov (!%p263_p2), 18   ;;  %s2244_s20 = smov (!%p263_p2), 127  }
   0x8   : > { %s2245_s21 = smov (!%p263_p2), 1   ;;  %s2246_s22 = smov (!%p263_p2), 110  }
   0x9   : > { %s2247_s23 = smov (!%p263_p2), 109   ;;  %s2248_s26 = smov (!%p263_p2), 108  }
   0xb   : > { %v308_v0 = vld [vmem:[%s2585_s3] sm:$0xff]  ;;  %v2239_v1 = vmov 0   ;;  %s2592_s28 = smov (!%p296_p3, %s1979_s28), 1  ;;  %vm332_vm0 = vcmask 1042432   ;;  %vm328_vm1 = vcmask 23552   ;;  %v2240_v17 = vmov 0.0  }
   0xc   : > { %2084 = vset.pattern.permute.xlu0 %v2239_v1  ;;  %2230 = vset.pattern.permute.xlu1 %v2239_v1  ;;  %s2064_s9 = smul.u32 12, %s2592_s28  ;;  %v307_v4 = vld [vmem:[%s2584_s2] sm:$0xff]  ;;  %vm431_vm2 = vcmask 154624   ;;  %v1992_v34 = vld [vmem:[%s2586_s4 + $0x8] sm:$0xff]  ;;  %vm438_vm3 = vcmask 64512   ;;  %vm590_vm4 = vcmask 146432  }
   0xd   : > { %317 = vperm.xlu0 %2084, %v308_v0   ;;  %v2317_v8 = vld [vmem:[%s2583_s1] sm:$0x7]  ;;  %vm510_vm5 = vcmask 162816   ;;  %v1999_v61 = vld [vmem:[%s2586_s4 + $0x10] sm:$0xff]  ;;  %vm673_vm6 = vcmask 7168   ;;  %vm832_vm7 = vcmask 1039360  }
   0xe   : > { %s300_s12 = scalar_lea.vmem %s2582_s0, %s2064_s9  ;;  %v400_v10 = vperm.slane %v2317_v8, 0  ;;  %v401_v16 = vperm.slane %v2317_v8, 1  ;;  %v402_v19 = vperm.slane %v2317_v8, 2  ;;  %v309_v29 = vld [vmem:[%s2587_s5] sm:$0xff]  ;;  %vm915_vm8 = vcmask 900096  }
   0xf   : > { %v313_v2 = vld [vmem:[%s300_s12] sm:$0x77]  ;;  %v314_v3 = vld [vmem:[%s300_s12 + $0x8] sm:$0x7]  ;;  %vm998_vm9 = vcmask 891904   ;;  %vm1081_vm10 = vcmask 883712  }
  0x10   : > { %322 = vst [vmem:[#allocation1] ss:$2 sm:$0xff] %v313_v2  ;;  %v415_v56 = vld [vmem:[%s2586_s4] sm:$0xff] }
  0x11   : > { %324 = vst [vmem:[#allocation1 + $0x10] ss:$2 sm:$0xff] %v314_v3 }
  0x17   : > { %v325_v5 = vld.sshfl [vmem:[#allocation1] sm:$0xff pattern:$0x75316420]  ;;  %v326_v6 = vld.sshfl [vmem:[#allocation1 + $0x8] sm:$0xff pattern:$0x75316420] }
  0x18   : > { %1986 = vmatpush.msk.msra.mxu0 %vm332_vm0, %v325_v5  ;;  %v327_v7 = vld.sshfl [vmem:[#allocation1 + $0x10] sm:$0xff pattern:$0x75316420]  ;;  %1988 = vmatpush.msk.msra.mxu1 %vm332_vm0, %v326_v6 }
  0x19   : > { %1990 = vmatpush.msk.msra.mxu2 %vm332_vm0, %v327_v7  ;;  %1987 = vmatmul.msk.f32.vlgmr.msra.gmra.mxu0 %vm328_vm1, %v307_v4 }
  0x1a   : > { %1991 = vmatmul.msk.f32.vlgmr.msra.gmra.mxu2 %vm328_vm1, %v307_v4  ;;  %1989 = vmatmul.msk.f32.vlgmr.msra.gmra.mxu1 %vm328_vm1, %v307_v4 }
  0x7f   : > { %v318_v9 = vpop.permute.xlu0 %317 }
  0x96   : > { %v356_v11 = vpop.f32.mrf.mxu0 }
  0x97   : > { %v357_v12 = vadd.f32 %v356_v11, %v318_v9  ;;  %v376_v13 = vpop.f32.mrf.mxu1 }
  0x98   : > { %v377_v15 = vadd.f32 %v376_v13, %v318_v9 }
  0x99   : > { %v2322_v14 = vmul.f32 %v400_v10, %v357_v12 }
  0x9a   : > { %v2331_v21 = vmul.f32 %v401_v16, %v377_v15  ;;  %v2003_v15 = vld [vmem:[%s2586_s4 + $0x18] sm:$0xff] }
  0x9b   : > { %v2085_v18 = vpack.i.bf16 %v2322_v14, %v2240_v17  ;;  %v2130_v28 = vpack.i.bf16 0.0, %v2322_v14 }
  0x9c   : > { %v2095_v26 = vpack.i.bf16 %v2331_v21, %v2322_v14 }
  0x9d   : > { %v396_v20 = vpop.f32.mrf.mxu2  ;;  %2086 = vrot.lane.b32.xlu0 %v2085_v18, %s2241_s17 }
  0x9e   : > { %v397_v22 = vadd.f32 %v396_v20, %v318_v9 }
  0xa0   : > { %v2335_v23 = vmul.f32 %v402_v19, %v397_v22 }
  0xa2   : > { %v2100_v24 = vpack.i.bf16 %v2335_v23, %v2240_v17  ;;  %v2090_v25 = vpack.i.bf16 %v2335_v23, %v2331_v21  ;;  %v2145_v27 = vpack.i.bf16 0.0, %v2335_v23 }
  0xa4   : > { %2101 = vrot.lane.b32.xlu2 %v2100_v24, %s2242_s18  ;;  %2091 = vrot.lane.b32.xlu1 %v2090_v25, %s2241_s17 }
  0xa5   : > { %2111 = vrot.lane.b32.xlu0 %v2085_v18, %s2243_s19 }
  0xac   : > { %2106 = vrot.lane.b32.xlu2 %v2090_v25, %s2243_s19  ;;  %2096 = vrot.lane.b32.xlu1 %v2095_v26, %s2242_s18 }
  0xad   : > { %2126 = vrot.lane.b32.xlu0 %v2090_v25, %s2244_s20 }
  0xb4   : > { %2121 = vrot.lane.b32.xlu2 %v2090_v25, %s2245_s21  ;;  %2116 = vrot.lane.b32.xlu1 %v2085_v18, %s2245_s21 }
  0xb5   : > { %2136 = vrot.lane.b32.xlu0 %v2095_v26, %s2246_s22 }
  0xbc   : > { %2146 = vrot.lane.b32.xlu2 %v2145_v27, %s2246_s22  ;;  %2131 = vrot.lane.b32.xlu1 %v2130_v28, %s2244_s20 }
  0xbd   : > { %2156 = vrot.lane.b32.xlu0 %v2145_v27, %s2247_s23 }
  0xc4   : > { %2151 = vrot.lane.b32.xlu2 %v2095_v26, %s2248_s26  ;;  %2141 = vrot.lane.b32.xlu1 %v2095_v26, %s2247_s23 }
  0xc5   : > { %1159 = vperm.xlu0 %2084, %v309_v29  }
  0xcc   : > { %1077 = vrot.lane.b32.xlu1 %v2335_v23, %s2248_s26  ;;  %1079 = vrot.lane.b32.xlu2 %v2240_v17, %s2248_s26 }
  0xfe   : > { %v2102_v30 = vpop.permute.xlu2 %2101 }
  0xff   : > { %v2104_v48 = vunpack.i.h.bf16 %v2102_v30  ;;  %v2103_v49 = vunpack.i.l.bf16 %v2102_v30  ;;  %v2007_v30 = vld [vmem:[%s2586_s4 + $0x20] sm:$0xff] }
 0x106   : > { %v2107_v36 = vpop.permute.xlu2 %2106 }
 0x107   : > { %v2109_v53 = vunpack.i.h.bf16 %v2107_v36  ;;  %v2108_v54 = vunpack.i.l.bf16 %v2107_v36 }
 0x109   : > { %v593_v63 = vsel %vm590_vm4, %v2108_v54, %v2109_v53  ;;  %v2023_v53 = vld [vmem:[%s2586_s4 + $0x40] sm:$0xff] }
 0x10e   : > { %v2122_v46 = vpop.permute.xlu2 %2121 }
 0x10f   : > { %v2087_v31 = vpop.permute.xlu0 %2086  ;;  %v2124_v55 = vunpack.i.h.bf16 %v2122_v46  ;;  %v2123_v57 = vunpack.i.l.bf16 %v2122_v46 }
 0x110   : > { %v2089_v32 = vunpack.i.h.bf16 %v2087_v31  ;;  %v2088_v33 = vunpack.i.l.bf16 %v2087_v31 }
 0x111   : > { %v676_v0 = vsel %vm673_vm6, %v2123_v57, %v2124_v55 }
 0x112   : > { %v432_v35 = vsel %vm431_vm2, %v2088_v33, %v2089_v32 }
 0x113   : > { %457 = vmatpush.msra.mxu3 %v432_v35 }
 0x114   : > { %1993 = vmatmul.msk.f32.vlgmr.msra.gmra.mxu3 %vm438_vm3, %v1992_v34 }
 0x116   : > { %v2092_v37 = vpop.permute.xlu1 %2091  ;;  %v2147_v13 = vpop.permute.xlu2 %2146 }
 0x117   : > { %v2094_v38 = vunpack.i.h.bf16 %v2092_v37  ;;  %v2093_v39 = vunpack.i.l.bf16 %v2092_v37  ;;  %v2112_v40 = vpop.permute.xlu0 %2111  ;;  %v2149_v26 = vunpack.i.h.bf16 %v2147_v13  ;;  %v2148_v27 = vunpack.i.l.bf16 %v2147_v13 }
 0x118   : > { %v2114_v41 = vunpack.i.h.bf16 %v2112_v40  ;;  %v2113_v42 = vunpack.i.l.bf16 %v2112_v40 }
 0x119   : > { %v433_v43 = vsel %vm431_vm2, %v2089_v32, %v2093_v39  ;;  %v434_v44 = vsel %vm431_vm2, %v2093_v39, %v2094_v38 }
 0x11a   : > { %477 = vmatpush.msrb.mxu0 %v433_v43  ;;  %497 = vmatpush.msrb.mxu1 %v434_v44  ;;  %v591_v45 = vsel %vm590_vm4, %v2113_v42, %v2114_v41  ;;  %v592_v62 = vsel %vm590_vm4, %v2114_v41, %v2108_v54  ;;  %v2011_v42 = vld [vmem:[%s2586_s4 + $0x28] sm:$0xff] }
 0x11b   : > { %1995 = vmatmul.msk.f32.vlgmr.msrb.gmra.mxu1 %vm438_vm3, %v1992_v34  ;;  %1994 = vmatmul.msk.f32.vlgmr.msrb.gmra.mxu0 %vm438_vm3, %v1992_v34  ;;  %v918_v34 = vsel %vm915_vm8, %v2148_v27, %v2149_v26 }
 0x11c   : > { %615 = vmatpush.msra.mxu1 %v591_v45  ;;  %v2015_v45 = vld [vmem:[%s2586_s4 + $0x30] sm:$0xff] }
 0x11e   : > { %v2097_v47 = vpop.permute.xlu1 %2096  ;;  %v2152_v32 = vpop.permute.xlu2 %2151 }
 0x11f   : > { %v2099_v50 = vunpack.i.h.bf16 %v2097_v47  ;;  %v2098_v51 = vunpack.i.l.bf16 %v2097_v47  ;;  %v2127_v52 = vpop.permute.xlu0 %2126  ;;  %v2154_v40 = vunpack.i.h.bf16 %v2152_v32  ;;  %v2153_v41 = vunpack.i.l.bf16 %v2152_v32 }
 0x120   : > { %v2129_v5 = vunpack.i.h.bf16 %v2127_v52  ;;  %v2128_v6 = vunpack.i.l.bf16 %v2127_v52  ;;  %v2019_v52 = vld [vmem:[%s2586_s4 + $0x38] sm:$0xff] }
 0x121   : > { %v511_v58 = vsel %vm510_vm5, %v2103_v49, %v2098_v51  ;;  %v512_v59 = vsel %vm510_vm5, %v2098_v51, %v2099_v50  ;;  %v513_v60 = vsel %vm510_vm5, %v2099_v50, %v2104_v48  ;;  %v1082_v47 = vsel %vm1081_vm10, %v2153_v41, %v2154_v40 }
 0x122   : > { %535 = vmatpush.msrb.mxu2 %v511_v58  ;;  %555 = vmatpush.msrb.mxu3 %v512_v59  ;;  %v834_v20 = vsel %vm832_vm7, %v2128_v6, %v2129_v5 }
 0x123   : > { %575 = vmatpush.msra.mxu0 %v513_v60  ;;  %1996 = vmatmul.msk.f32.vlgmr.msrb.gmra.mxu2 %vm438_vm3, %v415_v56 }
 0x124   : > { %1997 = vmatmul.msk.f32.vlgmr.msrb.gmra.mxu3 %vm438_vm3, %v415_v56  ;;  %635 = vmatpush.msra.mxu2 %v592_v62 }
 0x125   : > { %655 = vmatpush.msra.mxu3 %v593_v63  ;;  %2000 = vmatmul.msk.f32.vlgmr.msra.gmra.mxu1 %vm438_vm3, %v1999_v61 }
 0x126   : > { %738 = vmatpush.msrb.mxu2 %v676_v0  ;;  %v2117_v1 = vpop.permute.xlu1 %2116  ;;  %1998 = vmatmul.msk.f32.vlgmr.msra.gmra.mxu0 %vm438_vm3, %v415_v56  ;;  %v1080_v48 = vpop.permute.xlu2 %1079 }
 0x127   : > { %766 = vmatpush.msrb.mxu3 %v2322_v14  ;;  %v2119_v2 = vunpack.i.h.bf16 %v2117_v1  ;;  %v2118_v3 = vunpack.i.l.bf16 %v2117_v1  ;;  %v2137_v4 = vpop.permute.xlu0 %2136 }
 0x128   : > { %v2139_v7 = vunpack.i.h.bf16 %v2137_v4  ;;  %v2138_v9 = vunpack.i.l.bf16 %v2137_v4 }
 0x129   : > { %v674_v11 = vsel %vm673_vm6, %v2118_v3, %v2119_v2  ;;  %v675_v12 = vsel %vm673_vm6, %v2119_v2, %v2123_v57 }
 0x12a   : > { %698 = vmatpush.msrb.mxu0 %v674_v11  ;;  %718 = vmatpush.msrb.mxu1 %v675_v12  ;;  %v916_v18 = vsel %vm915_vm8, %v2138_v9, %v2139_v7  ;;  %v917_v31 = vsel %vm915_vm8, %v2139_v7, %v2148_v27 }
 0x12b   : > { %2001 = vmatmul.msk.f32.vlgmr.msra.gmra.mxu2 %vm438_vm3, %v1999_v61 }
 0x12c   : > { %786 = vmatpush.msra.mxu0 %v2331_v21  ;;  %2002 = vmatmul.msk.f32.vlgmr.msra.gmra.mxu3 %vm438_vm3, %v1999_v61 }
 0x12d   : > { %806 = vmatpush.msra.mxu1 %v2335_v23  ;;  %877 = vmatpush.msra.mxu3 %v834_v20 }
 0x12e   : > { %2005 = vmatmul.msk.f32.vlgmr.msrb.gmra.mxu1 %vm438_vm3, %v2003_v15  ;;  %v2132_v22 = vpop.permute.xlu1 %2131  ;;  %2004 = vmatmul.msk.f32.vlgmr.msrb.gmra.mxu0 %vm438_vm3, %v2003_v15 }
 0x12f   : > { %940 = vmatpush.msrb.mxu1 %v916_v18  ;;  %v2134_v24 = vunpack.i.h.bf16 %v2132_v22  ;;  %v2133_v25 = vunpack.i.l.bf16 %v2132_v22  ;;  %v2157_v33 = vpop.permute.xlu0 %2156 }
 0x130   : > { %v2159_v36 = vunpack.i.h.bf16 %v2157_v33  ;;  %v2158_v37 = vunpack.i.l.bf16 %v2157_v33 }
 0x131   : > { %v833_v28 = vsel %vm832_vm7, %v2133_v25, %v2128_v6  ;;  %v835_v29 = vsel %vm832_vm7, %v2129_v5, %v2134_v24 }
 0x132   : > { %857 = vmatpush.msra.mxu2 %v833_v28  ;;  %897 = vmatpush.msrb.mxu0 %v835_v29  ;;  %v1001_v46 = vsel %vm998_vm9, %v2158_v37, %v2159_v36 }
 0x133   : > { %2006 = vmatmul.msk.f32.vlgmr.msrb.gmra.mxu2 %vm438_vm3, %v2003_v15 }
 0x134   : > { %2008 = vmatmul.msk.f32.vlgmr.msrb.gmra.mxu3 %vm438_vm3, %v2007_v30  ;;  %960 = vmatpush.msrb.mxu2 %v917_v31 }
 0x135   : > { %980 = vmatpush.msrb.mxu3 %v918_v34 }
 0x136   : > { %2010 = vmatmul.msk.f32.vlgmr.msra.gmra.mxu1 %vm438_vm3, %v2007_v30  ;;  %v2142_v35 = vpop.permute.xlu1 %2141  ;;  %2009 = vmatmul.msk.f32.vlgmr.msra.gmra.mxu0 %vm438_vm3, %v2007_v30 }
 0x137   : > { %v2144_v38 = vunpack.i.h.bf16 %v2142_v35  ;;  %v2143_v39 = vunpack.i.l.bf16 %v2142_v35 }
 0x139   : > { %v999_v43 = vsel %vm998_vm9, %v2143_v39, %v2144_v38  ;;  %v1000_v44 = vsel %vm998_vm9, %v2144_v38, %v2158_v37 }
 0x13a   : > { %1023 = vmatpush.msra.mxu0 %v999_v43  ;;  %1043 = vmatpush.msra.mxu1 %v1000_v44 }
 0x13b   : > { %2012 = vmatmul.msk.f32.vlgmr.msra.gmra.mxu2 %vm438_vm3, %v2011_v42 }
 0x13c   : > { %2013 = vmatmul.msk.f32.vlgmr.msra.gmra.mxu3 %vm438_vm3, %v2011_v42  ;;  %1063 = vmatpush.msra.mxu2 %v1001_v46 }
 0x13d   : > { %1106 = vmatpush.msra.mxu3 %v1082_v47 }
 0x13e   : > { %2016 = vmatmul.msk.f32.vlgmr.msrb.gmra.mxu1 %vm438_vm3, %v2015_v45  ;;  %v1078_v49 = vpop.permute.xlu1 %1077  ;;  %2014 = vmatmul.msk.f32.vlgmr.msrb.gmra.mxu0 %vm438_vm3, %v2011_v42 }
 0x13f   : > { %v1083_v50 = vsel %vm1081_vm10, %v2154_v40, %v1078_v49  ;;  %v1084_v51 = vsel %vm1081_vm10, %v1078_v49, %v1080_v48  ;;  %v1160_v49 = vpop.permute.xlu0 %1159 }
 0x140   : > { %1126 = vmatpush.msrb.mxu0 %v1083_v50  ;;  %1146 = vmatpush.msrb.mxu1 %v1084_v51 }
 0x143   : > { %2017 = vmatmul.msk.f32.vlgmr.msrb.gmra.mxu2 %vm438_vm3, %v2015_v45 }
 0x144   : > { %2018 = vmatmul.msk.f32.vlgmr.msrb.gmra.mxu3 %vm438_vm3, %v2015_v45 }
 0x146   : > { %2021 = vmatmul.msk.f32.vlgmr.msra.gmra.mxu1 %vm438_vm3, %v2019_v52  ;;  %2020 = vmatmul.msk.f32.vlgmr.msra.gmra.mxu0 %vm438_vm3, %v2019_v52 }
 0x14b   : > { %2022 = vmatmul.msk.f32.vlgmr.msra.gmra.mxu2 %vm438_vm3, %v2019_v52 }
 0x14c   : > { %2024 = vmatmul.msk.f32.vlgmr.msra.gmra.mxu3 %vm438_vm3, %v2023_v53 }
 0x14e   : > { %2026 = vmatmul.msk.f32.vlgmr.msrb.gmra.mxu1 %vm438_vm3, %v2023_v53  ;;  %2025 = vmatmul.msk.f32.vlgmr.msrb.gmra.mxu0 %vm438_vm3, %v2023_v53 }
 0x197   : > { %v459_v56 = vpop.f32.mrf.mxu3 }
 0x198   : > { %v499_v54 = vpop.f32.mrf.mxu1  ;;  %v479_v55 = vpop.f32.mrf.mxu0 }
 0x1a2   : > { %v617_v57 = vpop.f32.mrf.mxu1 }
 0x1a3   : > { %v577_v58 = vpop.f32.mrf.mxu0 }
 0x1a4   : > { %v578_v15 = vadd.f32 %v577_v58, %v499_v54 }
 0x1a6   : > { %v537_v59 = vpop.f32.mrf.mxu2 }
 0x1a7   : > { %v557_v60 = vpop.f32.mrf.mxu3  ;;  %v538_v6 = vadd.f32 %v537_v59, %v459_v56  ;;  %v2027_v59 = vld [vmem:[%s2588_s6 + $0x8] sm:$0xff] }
 0x1a8   : > { %v558_v5 = vadd.f32 %v557_v60, %v479_v55 }
 0x1a9   : > { %v660_v12 = vadd.f32 %v617_v57, %v538_v6 }
 0x1ab   : > { %v720_v61 = vpop.f32.mrf.mxu1  ;;  %v700_v62 = vpop.f32.mrf.mxu0 }
 0x1ac   : > { %v743_v24 = vadd.f32 %v700_v62, %v660_v12 }
 0x1ae   : > { %v637_v63 = vpop.f32.mrf.mxu2 }
 0x1af   : > { %v657_v0 = vpop.f32.mrf.mxu3  ;;  %v661_v9 = vadd.f32 %v637_v63, %v558_v5 }
 0x1b0   : > { %v662_v22 = vadd.f32 %v657_v0, %v578_v15  ;;  %v2034_v0 = vld [vmem:[%s2588_s6 + $0x10] sm:$0xff] }
 0x1b1   : > { %v744_v18 = vadd.f32 %v720_v61, %v661_v9 }
 0x1b3   : > { %v808_v1 = vpop.f32.mrf.mxu1  ;;  %v788_v2 = vpop.f32.mrf.mxu0 }
 0x1b4   : > { %v812_v25 = vadd.f32 %v788_v2, %v744_v18 }
 0x1b6   : > { %v740_v3 = vpop.f32.mrf.mxu2 }
 0x1b7   : > { %v768_v4 = vpop.f32.mrf.mxu3  ;;  %v745_v26 = vadd.f32 %v740_v3, %v662_v22 }
 0x1b8   : > { %v811_v27 = vadd.f32 %v768_v4, %v743_v24 }
 0x1b9   : > { %v813_v33 = vadd.f32 %v808_v1, %v745_v26  ;;  %v1171_v26 = vld [vmem:[%s2588_s6] sm:$0xff] }
 0x1bb   : > { %v942_v7 = vpop.f32.mrf.mxu1  ;;  %v899_v11 = vpop.f32.mrf.mxu0 }
 0x1bc   : > { %v904_v38 = vadd.f32 %v899_v11, %v813_v33 }
 0x1be   : > { %v859_v13 = vpop.f32.mrf.mxu2 }
 0x1bf   : > { %v879_v20 = vpop.f32.mrf.mxu3  ;;  %v902_v31 = vadd.f32 %v859_v13, %v811_v27 }
 0x1c0   : > { %v903_v30 = vadd.f32 %v879_v20, %v812_v25 }
 0x1c1   : > { %v985_v37 = vadd.f32 %v942_v7, %v902_v31 }
 0x1c3   : > { %v1025_v28 = vpop.f32.mrf.mxu0  ;;  %v1045_v29 = vpop.f32.mrf.mxu1 }
 0x1c4   : > { %v1068_v42 = vadd.f32 %v1025_v28, %v985_v37 }
 0x1c6   : > { %v962_v32 = vpop.f32.mrf.mxu2 }
 0x1c7   : > { %v986_v34 = vadd.f32 %v962_v32, %v903_v30  ;;  %v982_v35 = vpop.f32.mrf.mxu3 }
 0x1c8   : > { %v987_v40 = vadd.f32 %v982_v35, %v904_v38 }
 0x1c9   : > { %v1069_v36 = vadd.f32 %v1045_v29, %v986_v34 }
 0x1cb   : > { %v1128_v39 = vpop.f32.mrf.mxu0  ;;  %v1148_v44 = vpop.f32.mrf.mxu1 }
 0x1cc   : > { %v1152_v41 = vadd.f32 %v1128_v39, %v1069_v36 }
 0x1ce   : > { %v1065_v43 = vpop.f32.mrf.mxu2  ;;  %v1155_v45 = vadd.f32 %v1152_v41, %v2331_v21 }
 0x1cf   : > { %v1070_v46 = vadd.f32 %v1065_v43, %v987_v40  ;;  %v1108_v47 = vpop.f32.mrf.mxu3 }
 0x1d0   : > { %v1151_v48 = vadd.f32 %v1108_v47, %v1068_v42  ;;  %v1163_v51 = vadd.f32 %v1160_v49, %v1155_v45  ;;  %v2038_v42 = vld [vmem:[%s2588_s6 + $0x18] sm:$0xff] }
 0x1d1   : > { %v1153_v50 = vadd.f32 %v1148_v44, %v1070_v46 }
 0x1d2   : > { %v1154_v52 = vadd.f32 %v1151_v48, %v2322_v14  ;;  %v2452_v56 = vmul.f32 %v1163_v51, %v401_v16 }
 0x1d3   : > { %v1156_v53 = vadd.f32 %v1153_v50, %v2335_v23 }
 0x1d4   : > { %v1162_v54 = vadd.f32 %v1160_v49, %v1154_v52 }
 0x1d5   : > { %v1164_v55 = vadd.f32 %v1160_v49, %v1156_v53  ;;  %v310_v49 = vld [vmem:[%s2589_s7] sm:$0xff] }
 0x1d6   : > { %v2456_v57 = vmul.f32 %v1162_v54, %v400_v10 }
 0x1d7   : > { %v2460_v21 = vmul.f32 %v1164_v55, %v402_v19 }
 0x1d8   : > { %v2170_v58 = vpack.i.bf16 %v2452_v56, %v2456_v57  ;;  %v2160_v14 = vpack.i.bf16 %v2456_v57, %v2240_v17 }
 0x1d9   : > { %v2165_v23 = vpack.i.bf16 %v2460_v21, %v2452_v56  ;;  %v2175_v10 = vpack.i.bf16 0.0, %v2460_v21 }
 0x1da   : > { %2171 = vrot.lane.b32.xlu0 %v2170_v58, %s2242_s18  ;;  %2161 = vrot.lane.b32.xlu1 %v2160_v14, %s2241_s17 }
 0x1db   : > { %2166 = vrot.lane.b32.xlu2 %v2165_v23, %s2241_s17  ;;  %s2065_s17 = smul.u32 24, %s2592_s28 }
 0x1e2   : > { %2186 = vrot.lane.b32.xlu0 %v2165_v23, %s2243_s19  ;;  %2176 = vrot.lane.b32.xlu1 %v2175_v10, %s2242_s18 }
 0x1e3   : > { %2181 = vrot.lane.b32.xlu2 %v2160_v14, %s2243_s19 }
 0x1ea   : > { %2201 = vrot.lane.b32.xlu0 %v2165_v23, %s2244_s20  ;;  %2191 = vrot.lane.b32.xlu1 %v2160_v14, %s2245_s21 }
 0x1eb   : > { %2196 = vrot.lane.b32.xlu2 %v2165_v23, %s2245_s21 }
 0x1f2   : > { %2216 = vrot.lane.b32.xlu0 %v2175_v10, %s2246_s22  ;;  %2206 = vrot.lane.b32.xlu1 %v2160_v14, %s2244_s20  ;;  %s305_s20 = scalar_lea.vmem %s2590_s8, %s2065_s17 }
 0x1f3   : > { %2211 = vrot.lane.b32.xlu2 %v2170_v58, %s2246_s22 }
 0x1fa   : > { %2226 = vrot.lane.b32.xlu0 %v2170_v58, %s2248_s26  ;;  %2221 = vrot.lane.b32.xlu1 %v2170_v58, %s2247_s23 }
 0x1fb   : > { %1746 = vrot.lane.b32.xlu2 %v2460_v21, %s2247_s23 }
 0x202   : > { %1830 = vrot.lane.b32.xlu0 %v2240_v17, %s2248_s26  ;;  %1828 = vrot.lane.b32.xlu1 %v2460_v21, %s2248_s26 }
 0x203   : > { %1748 = vrot.lane.b32.xlu2 %v2240_v17, %s2247_s23 }
 0x20a   : > { %1906 = vperm.xlu1 %2230, %v310_v49  }
 0x235   : > { %v2167_v8 = vpop.permute.xlu2 %2166 }
 0x236   : > { %v2169_v16 = vunpack.i.h.bf16 %v2167_v8  ;;  %v2168_v19 = vunpack.i.l.bf16 %v2167_v8 }
 0x238   : > { %v1192_v60 = vsel %vm431_vm2, %v2168_v19, %v2169_v16 }
 0x239   : > { %1254 = vmatpush.msra.mxu0 %v1192_v60 }
 0x23a   : > { %2030 = vmatmul.msk.f32.vlgmr.msra.gmra.mxu0 %vm438_vm3, %v2027_v59 }
 0x23d   : > { %v2182_v61 = vpop.permute.xlu2 %2181 }
 0x23e   : > { %v2184_v62 = vunpack.i.h.bf16 %v2182_v61  ;;  %v2183_v63 = vunpack.i.l.bf16 %v2182_v61 }
 0x240   : > { %v1346_v17 = vsel %vm590_vm4, %v2183_v63, %v2184_v62 }
 0x241   : > { %1370 = vmatpush.msrb.mxu0 %v1346_v17 }
 0x242   : > { %2035 = vmatmul.msk.f32.vlgmr.msrb.gmra.mxu0 %vm438_vm3, %v2034_v0 }
 0x245   : > { %v2197_v12 = vpop.permute.xlu2 %2196 }
 0x246   : > { %v2199_v25 = vunpack.i.h.bf16 %v2197_v12  ;;  %v2198_v27 = vunpack.i.l.bf16 %v2197_v12 }
 0x248   : > { %v1430_v33 = vsel %vm673_vm6, %v2198_v27, %v2199_v25 }
 0x24c   : > { %v2172_v1 = vpop.permute.xlu0 %2171  ;;  %v2162_v2 = vpop.permute.xlu1 %2161 }
 0x24d   : > { %v2174_v3 = vunpack.i.h.bf16 %v2172_v1  ;;  %v2173_v4 = vunpack.i.l.bf16 %v2172_v1  ;;  %v2164_v5 = vunpack.i.h.bf16 %v2162_v2  ;;  %v2163_v6 = vunpack.i.l.bf16 %v2162_v2  ;;  %v2212_v32 = vpop.permute.xlu2 %2211 }
 0x24e   : > { %v2214_v43 = vunpack.i.h.bf16 %v2212_v32  ;;  %v2213_v44 = vunpack.i.l.bf16 %v2212_v32 }
 0x24f   : > { %v1190_v7 = vsel %vm431_vm2, %v2163_v6, %v2164_v5  ;;  %v1191_v9 = vsel %vm431_vm2, %v2164_v5, %v2168_v19  ;;  %v1268_v11 = vsel %vm510_vm5, %v2173_v4, %v2174_v3  ;;  %v2054_v5 = vld [vmem:[%s2588_s6 + $0x38] sm:$0xff]  ;;  %v2058_v6 = vld [vmem:[%s2588_s6 + $0x40] sm:$0xff] }
 0x250   : > { %1214 = vmatpush.msrb.mxu2 %v1190_v7  ;;  %1234 = vmatpush.msrb.mxu3 %v1191_v9  ;;  %v1668_v46 = vsel %vm915_vm8, %v2213_v44, %v2214_v43 }
 0x251   : > { %2028 = vmatmul.msk.f32.vlgmr.msrb.gmra.mxu2 %vm438_vm3, %v2027_v59  ;;  %2029 = vmatmul.msk.f32.vlgmr.msrb.gmra.mxu3 %vm438_vm3, %v2027_v59  ;;  %v2046_v59 = vld [vmem:[%s2588_s6 + $0x28] sm:$0xff] }
 0x252   : > { %1311 = vmatpush.msra.mxu2 %v1268_v11 }
 0x254   : > { %v2187_v13 = vpop.permute.xlu0 %2186  ;;  %v2177_v15 = vpop.permute.xlu1 %2176 }
 0x255   : > { %v2189_v18 = vunpack.i.h.bf16 %v2187_v13  ;;  %v2188_v20 = vunpack.i.l.bf16 %v2187_v13  ;;  %v2179_v22 = vunpack.i.h.bf16 %v2177_v15  ;;  %v2178_v24 = vunpack.i.l.bf16 %v2177_v15  ;;  %v1747_v50 = vpop.permute.xlu2 %1746 }
 0x257   : > { %v1267_v28 = vsel %vm510_vm5, %v2179_v22, %v2173_v4  ;;  %v1269_v29 = vsel %vm510_vm5, %v2174_v3, %v2178_v24  ;;  %v1348_v30 = vsel %vm590_vm4, %v2188_v20, %v2189_v18  ;;  %v1347_v31 = vsel %vm590_vm4, %v2184_v62, %v2188_v20 }
 0x258   : > { %1291 = vmatpush.msra.mxu1 %v1267_v28  ;;  %1331 = vmatpush.msra.mxu3 %v1269_v29 }
 0x259   : > { %1410 = vmatpush.msrb.mxu2 %v1348_v30  ;;  %2031 = vmatmul.msk.f32.vlgmr.msra.gmra.mxu1 %vm438_vm3, %v1171_v26 }
 0x25a   : > { %2032 = vmatmul.msk.f32.vlgmr.msra.gmra.mxu2 %vm438_vm3, %v1171_v26  ;;  %2033 = vmatmul.msk.f32.vlgmr.msra.gmra.mxu3 %vm438_vm3, %v1171_v26 }
 0x25b   : > { %1390 = vmatpush.msrb.mxu1 %v1347_v31  ;;  %1520 = vmatpush.msra.mxu2 %v2456_v57  ;;  %v2042_v57 = vld [vmem:[%s2588_s6 + $0x20] sm:$0xff] }
 0x25c   : > { %v2202_v34 = vpop.permute.xlu0 %2201  ;;  %v2192_v35 = vpop.permute.xlu1 %2191 }
 0x25d   : > { %1492 = vmatpush.msra.mxu1 %v1430_v33  ;;  %v2204_v36 = vunpack.i.h.bf16 %v2202_v34  ;;  %v2203_v37 = vunpack.i.l.bf16 %v2202_v34  ;;  %v2194_v38 = vunpack.i.h.bf16 %v2192_v35  ;;  %v2193_v39 = vunpack.i.l.bf16 %v2192_v35  ;;  %v1749_v60 = vpop.permute.xlu2 %1748 }
 0x25e   : > { %v1752_v17 = vsel %vm998_vm9, %v1747_v50, %v1749_v60 }
 0x25f   : > { %v1428_v40 = vsel %vm673_vm6, %v2193_v39, %v2194_v38  ;;  %v1429_v41 = vsel %vm673_vm6, %v2194_v38, %v2198_v27  ;;  %v1587_v45 = vsel %vm832_vm7, %v2203_v37, %v2204_v36 }
 0x260   : > { %1452 = vmatpush.msrb.mxu3 %v1428_v40  ;;  %1472 = vmatpush.msra.mxu0 %v1429_v41 }
 0x261   : > { %2036 = vmatmul.msk.f32.vlgmr.msrb.gmra.mxu1 %vm438_vm3, %v2034_v0  ;;  %2040 = vmatmul.msk.f32.vlgmr.msra.gmra.mxu0 %vm438_vm3, %v2038_v42 }
 0x262   : > { %1540 = vmatpush.msra.mxu3 %v2452_v56  ;;  %2037 = vmatmul.msk.f32.vlgmr.msrb.gmra.mxu2 %vm438_vm3, %v2034_v0  ;;  %v2050_v0 = vld [vmem:[%s2588_s6 + $0x30] sm:$0xff] }
 0x263   : > { %2039 = vmatmul.msk.f32.vlgmr.msrb.gmra.mxu3 %vm438_vm3, %v2038_v42  ;;  %1560 = vmatpush.msrb.mxu0 %v2460_v21 }
 0x264   : > { %1630 = vmatpush.msrb.mxu2 %v1587_v45  ;;  %v2217_v47 = vpop.permute.xlu0 %2216  ;;  %v2207_v48 = vpop.permute.xlu1 %2206 }
 0x265   : > { %1692 = vmatpush.msra.mxu0 %v1668_v46  ;;  %v2219_v51 = vunpack.i.h.bf16 %v2217_v47  ;;  %v2218_v52 = vunpack.i.l.bf16 %v2217_v47  ;;  %v2209_v53 = vunpack.i.h.bf16 %v2207_v48  ;;  %v2208_v54 = vunpack.i.l.bf16 %v2207_v48 }
 0x267   : > { %v1586_v55 = vsel %vm832_vm7, %v2209_v53, %v2203_v37  ;;  %v1588_v56 = vsel %vm832_vm7, %v2204_v36, %v2208_v54  ;;  %v1669_v21 = vsel %vm915_vm8, %v2214_v43, %v2218_v52  ;;  %v1670_v58 = vsel %vm915_vm8, %v2218_v52, %v2219_v51 }
 0x268   : > { %1610 = vmatpush.msrb.mxu1 %v1586_v55  ;;  %1650 = vmatpush.msrb.mxu3 %v1588_v56 }
 0x269   : > { %2041 = vmatmul.msk.f32.vlgmr.msra.gmra.mxu1 %vm438_vm3, %v2038_v42  ;;  %2045 = vmatmul.msk.f32.vlgmr.msrb.gmra.mxu0 %vm438_vm3, %v2042_v57 }
 0x26a   : > { %2043 = vmatmul.msk.f32.vlgmr.msra.gmra.mxu2 %vm438_vm3, %v2042_v57  ;;  %1712 = vmatpush.msra.mxu1 %v1669_v21 }
 0x26b   : > { %2044 = vmatmul.msk.f32.vlgmr.msra.gmra.mxu3 %vm438_vm3, %v2042_v57  ;;  %1732 = vmatpush.msra.mxu2 %v1670_v58 }
 0x26c   : > { %v2227_v14 = vpop.permute.xlu0 %2226  ;;  %v2222_v23 = vpop.permute.xlu1 %2221 }
 0x26d   : > { %v2229_v10 = vunpack.i.h.bf16 %v2227_v14  ;;  %v2228_v8 = vunpack.i.l.bf16 %v2227_v14  ;;  %v2224_v16 = vunpack.i.h.bf16 %v2222_v23  ;;  %v2223_v19 = vunpack.i.l.bf16 %v2222_v23 }
 0x26f   : > { %v1750_v61 = vsel %vm998_vm9, %v2223_v19, %v2224_v16  ;;  %v1751_v62 = vsel %vm998_vm9, %v2224_v16, %v1747_v50  ;;  %v1832_v63 = vsel %vm1081_vm10, %v2228_v8, %v2229_v10 }
 0x270   : > { %1774 = vmatpush.msra.mxu3 %v1750_v61  ;;  %1794 = vmatpush.msrb.mxu0 %v1751_v62 }
 0x271   : > { %2047 = vmatmul.msk.f32.vlgmr.msrb.gmra.mxu1 %vm438_vm3, %v2046_v59  ;;  %2051 = vmatmul.msk.f32.vlgmr.msra.gmra.mxu0 %vm438_vm3, %v2050_v0 }
 0x272   : > { %2048 = vmatmul.msk.f32.vlgmr.msrb.gmra.mxu2 %vm438_vm3, %v2046_v59  ;;  %1814 = vmatpush.msrb.mxu1 %v1752_v17 }
 0x273   : > { %2049 = vmatmul.msk.f32.vlgmr.msrb.gmra.mxu3 %vm438_vm3, %v2046_v59  ;;  %1856 = vmatpush.msrb.mxu2 %v1832_v63 }
 0x274   : > { %v1831_v1 = vpop.permute.xlu0 %1830  ;;  %v1829_v2 = vpop.permute.xlu1 %1828 }
 0x275   : > { %v1833_v3 = vsel %vm1081_vm10, %v2229_v10, %v1829_v2  ;;  %v1834_v4 = vsel %vm1081_vm10, %v1829_v2, %v1831_v1 }
 0x276   : > { %1876 = vmatpush.msrb.mxu3 %v1833_v3  ;;  %1896 = vmatpush.msra.mxu0 %v1834_v4 }
 0x279   : > { %2052 = vmatmul.msk.f32.vlgmr.msra.gmra.mxu1 %vm438_vm3, %v2050_v0  ;;  %2056 = vmatmul.msk.f32.vlgmr.msrb.gmra.mxu0 %vm438_vm3, %v2054_v5 }
 0x27a   : > { %2053 = vmatmul.msk.f32.vlgmr.msra.gmra.mxu2 %vm438_vm3, %v2050_v0 }
 0x27b   : > { %2055 = vmatmul.msk.f32.vlgmr.msra.gmra.mxu3 %vm438_vm3, %v2054_v5 }
 0x27c   : > { %v1907_v21 = vpop.permute.xlu1 %1906 }
 0x281   : > { %2057 = vmatmul.msk.f32.vlgmr.msrb.gmra.mxu1 %vm438_vm3, %v2054_v5  ;;  %2061 = vmatmul.msk.f32.vlgmr.msra.gmra.mxu0 %vm438_vm3, %v2058_v6 }
 0x282   : > { %2059 = vmatmul.msk.f32.vlgmr.msrb.gmra.mxu2 %vm438_vm3, %v2058_v6 }
 0x283   : > { %2060 = vmatmul.msk.f32.vlgmr.msrb.gmra.mxu3 %vm438_vm3, %v2058_v6 }
 0x2b7   : > { %v1256_v7 = vpop.f32.mrf.mxu0 }
 0x2bf   : > { %v1372_v13 = vpop.f32.mrf.mxu0 }
 0x2d4   : > { %v1216_v9 = vpop.f32.mrf.mxu2  ;;  %v1236_v11 = vpop.f32.mrf.mxu3 }
 0x2d6   : > { %v1293_v12 = vpop.f32.mrf.mxu1 }
 0x2d7   : > { %v1294_v34 = vadd.f32 %v1293_v12, %v1216_v9 }
 0x2d9   : > { %v1415_v39 = vadd.f32 %v1372_v13, %v1294_v34 }
 0x2dd   : > { %v1313_v15 = vpop.f32.mrf.mxu2  ;;  %v1333_v18 = vpop.f32.mrf.mxu3 }
 0x2de   : > { %v1392_v20 = vpop.f32.mrf.mxu1  ;;  %v1474_v22 = vpop.f32.mrf.mxu0  ;;  %v1314_v31 = vadd.f32 %v1313_v15, %v1236_v11  ;;  %v1334_v32 = vadd.f32 %v1333_v18, %v1256_v7 }
 0x2e0   : > { %v1416_v36 = vadd.f32 %v1392_v20, %v1314_v31 }
 0x2e2   : > { %v1498_v42 = vadd.f32 %v1474_v22, %v1416_v36 }
 0x2e5   : > { %v1412_v24 = vpop.f32.mrf.mxu2 }
 0x2e6   : > { %v1454_v25 = vpop.f32.mrf.mxu3  ;;  %v1494_v26 = vpop.f32.mrf.mxu1  ;;  %v1417_v35 = vadd.f32 %v1412_v24, %v1334_v32 }
 0x2e7   : > { %v1562_v27 = vpop.f32.mrf.mxu0  ;;  %v1497_v43 = vadd.f32 %v1454_v25, %v1415_v39 }
 0x2e8   : > { %v1499_v40 = vadd.f32 %v1494_v26, %v1417_v35 }
 0x2ea   : > { %v1567_v45 = vadd.f32 %v1562_v27, %v1499_v40 }
 0x2ed   : > { %v1522_v28 = vpop.f32.mrf.mxu2 }
 0x2ee   : > { %v1542_v29 = vpop.f32.mrf.mxu3  ;;  %v1612_v30 = vpop.f32.mrf.mxu1  ;;  %v1565_v46 = vadd.f32 %v1522_v28, %v1497_v43 }
 0x2ef   : > { %v1694_v33 = vpop.f32.mrf.mxu0  ;;  %v1566_v47 = vadd.f32 %v1542_v29, %v1498_v42 }
 0x2f0   : > { %v1655_v52 = vadd.f32 %v1612_v30, %v1565_v46 }
 0x2f2   : > { %v1737_v58 = vadd.f32 %v1694_v33, %v1655_v52 }
 0x2f5   : > { %v1632_v37 = vpop.f32.mrf.mxu2 }
 0x2f6   : > { %v1652_v38 = vpop.f32.mrf.mxu3  ;;  %v1714_v41 = vpop.f32.mrf.mxu1  ;;  %v1656_v48 = vadd.f32 %v1632_v37, %v1566_v47 }
 0x2f7   : > { %v1796_v44 = vpop.f32.mrf.mxu0  ;;  %v1657_v49 = vadd.f32 %v1652_v38, %v1567_v45 }
 0x2f8   : > { %v1738_v55 = vadd.f32 %v1714_v41, %v1656_v48 }
 0x2fa   : > { %v1820_v23 = vadd.f32 %v1796_v44, %v1738_v55 }
 0x2fd   : > { %v1734_v50 = vpop.f32.mrf.mxu2 }
 0x2fe   : > { %v1776_v51 = vpop.f32.mrf.mxu3  ;;  %v1739_v53 = vadd.f32 %v1734_v50, %v1657_v49  ;;  %v1816_v54 = vpop.f32.mrf.mxu1 }
 0x2ff   : > { %v1898_v57 = vpop.f32.mrf.mxu0  ;;  %v1819_v10 = vadd.f32 %v1776_v51, %v1737_v58 }
 0x300   : > { %v1821_v56 = vadd.f32 %v1816_v54, %v1739_v53 }
 0x302   : > { %v1903_v14 = vadd.f32 %v1898_v57, %v1821_v56 }
 0x304   : > { %v1911_v8 = vadd.f32 %v1907_v21, %v1903_v14 }
 0x305   : > { %v1858_v16 = vpop.f32.mrf.mxu2 }
 0x306   : > { %v1878_v19 = vpop.f32.mrf.mxu3  ;;  %vm1914_vm11 = vcmp.gt.f32.partialorder %v1911_v8, 0.0  ;;  %v1917_v59 = vmul.f32 0.2, %v1911_v8  ;;  %v1901_v60 = vadd.f32 %v1858_v16, %v1819_v10 }
 0x307   : > { %v1902_v61 = vadd.f32 %v1878_v19, %v1820_v23 }
 0x308   : > { %v1920_v62 = vsel %vm1914_vm11, %v1911_v8, %v1917_v59  ;;  %v1909_v63 = vadd.f32 %v1907_v21, %v1901_v60 }
 0x309   : > { %v1910_v0 = vadd.f32 %v1907_v21, %v1902_v61  ;;  %1923 = vst [vmem:[%s305_s20 + $0x10] sm:$0xff] %v1920_v62 }
 0x30a   : > { %vm1912_vm12 = vcmp.gt.f32.partialorder %v1909_v63, 0.0  ;;  %v1915_v17 = vmul.f32 0.2, %v1909_v63 }
 0x30b   : > { %vm1913_vm13 = vcmp.gt.f32.partialorder %v1910_v0, 0.0  ;;  %v1916_v1 = vmul.f32 0.2, %v1910_v0 }
 0x30c   : > { %v1918_v2 = vsel %vm1912_vm12, %v1909_v63, %v1915_v17 }
 0x30d   : > { %v1919_v3 = vsel %vm1913_vm13, %v1910_v0, %v1916_v1  ;;  %1921 = vst [vmem:[%s305_s20] sm:$0xff] %v1918_v2 }
 0x30e   : > { %1922 = vst [vmem:[%s305_s20 + $0x8] sm:$0xff] %v1919_v3 }
 0x30f PF: > { %s18_s27 = sadd.s32 1, %s2237_s27  }
 0x310   : > { %p15_p4 = scmp.ge.s32.totalorder %s18_s27, 4  }
 0x312   :  { %17 = sbr.rel (!%p15_p4) target bundleno = 1 (0x1), region = 99 }

</bundles_post_ra>
